<compile_context>
chip_gen: v7x
topology: tpu7x:2x2x1
jax: 0.10.0
libtpu: 0.0.40
codegen_flags: <defaults>
</compile_context>

<pallas_src>
import jax
import jax.numpy as jnp
from jax.experimental import pallas as pl
from jax.experimental.pallas import tpu as pltpu


def _mlp_kernel(x_ref, w1_ref, b1_ref, w2_ref, b2_ref, w3_ref, b3_ref, o_ref):
    """Fused 3-layer MLP: relu(relu(x@W1+b1)@W2+b2)@W3+b3, bf16 MXU, f32 accum."""
    x = x_ref[...]  # bf16 (block_batch, D)

    h = jnp.dot(x, w1_ref[...], preferred_element_type=jnp.float32) + b1_ref[...]
    h = jnp.maximum(h, 0.0)                       # ReLU
    # TODO(synk): Dropout(p=0.2) omitted — identity at inference (eval) time.

    h = jnp.dot(h.astype(jnp.bfloat16), w2_ref[...],
                preferred_element_type=jnp.float32) + b2_ref[...]
    h = jnp.maximum(h, 0.0)                       # ReLU

    out = jnp.dot(h.astype(jnp.bfloat16), w3_ref[...],
                  preferred_element_type=jnp.float32) + b3_ref[...]
    o_ref[...] = out.astype(o_ref.dtype)


def _round_up(x, m):
    return ((x + m - 1) // m) * m


def _choose_block_batch(batch, target=1024):
    """Pick a batch tile size.

    Small batches: one full-batch tile (rounded up to 16 for bf16 sublane packing).
    Large batches: ~`target`-row tiles, capped at ceil(B/2) so the grid always has
    at least 2 "parallel" steps and v7x's two TensorCores both get work.
    """
    if batch <= target:
        return _round_up(batch, 16)
    half = _round_up(pl.cdiv(batch, 2), 16)
    return min(_round_up(target, 16), half)


def drwiggle_nn_forward(x, params, *, block_batch=None):
    """Run the DrWiggleNN forward pass with a fused Pallas kernel.

    Args:
      x: (batch, input_dim) float32 (or bf16) activations.
      params: dict with w1 (D, H1), b1 (1, H1), w2 (H1, H2), b2 (1, H2),
              w3 (H2, C), b3 (1, C).  Weights are (in_features, out_features),
              the transpose of PyTorch nn.Linear.weight.
      block_batch: optional batch tile size override (multiple of 16 recommended);
                   by default chosen automatically (full batch if small, ~1024
                   rows otherwise with >= 2 grid steps for v7x).
    """
    B, D = x.shape
    H1 = params["w1"].shape[1]
    H2 = params["w2"].shape[1]
    C = params["w3"].shape[1]

    # Guard against accidentally passing PyTorch-layout (out, in) weights.
    assert params["w1"].shape == (D, H1), params["w1"].shape
    assert params["w2"].shape == (H1, H2), params["w2"].shape
    assert params["w3"].shape == (H2, C), params["w3"].shape
    assert params["b1"].shape == (1, H1)
    assert params["b2"].shape == (1, H2)
    assert params["b3"].shape == (1, C)

    if block_batch is None:
        block_batch = _choose_block_batch(B)

    grid = (pl.cdiv(B, block_batch),)

    # bf16 operands for the MXU; biases stay f32 (f32 accumulation in-kernel).
    x_bf16 = x.astype(jnp.bfloat16)
    w1 = params["w1"].astype(jnp.bfloat16)
    w2 = params["w2"].astype(jnp.bfloat16)
    w3 = params["w3"].astype(jnp.bfloat16)
    b1 = params["b1"].astype(jnp.float32)
    b2 = params["b2"].astype(jnp.float32)
    b3 = params["b3"].astype(jnp.float32)

    # Weights/biases are tiny (<20 KiB): full-array blocks with a constant
    # index_map stay VMEM-resident (no per-step re-DMA).
    full = lambda shape: pl.BlockSpec(shape, lambda i: (0, 0))

    return pl.pallas_call(
        _mlp_kernel,
        out_shape=jax.ShapeDtypeStruct((B, C), jnp.float32),
        grid_spec=pltpu.PrefetchScalarGridSpec(
            num_scalar_prefetch=0,
            grid=grid,
            in_specs=[
                pl.BlockSpec((block_batch, D), lambda i: (i, 0)),   # x tile
                full((D, H1)),
                full((1, H1)),
                full((H1, H2)),
                full((1, H2)),
                full((H2, C)),
                full((1, C)),
            ],
            out_specs=pl.BlockSpec((block_batch, C), lambda i: (i, 0)),
        ),
        compiler_params=pltpu.CompilerParams(
            dimension_semantics=("parallel",)),
    )(x_bf16, w1, b1, w2, b2, w3, b3)


def init_params(key, input_dim, hidden_layers, num_classes, ordinal_output=False):
    """Deterministic init mimicking nn.Linear default U(-1/sqrt(fan_in), 1/sqrt(fan_in)).

    Weights are stored as (in_features, out_features) — transpose of PyTorch.
    """
    dims = [input_dim] + list(hidden_layers) + [1 if ordinal_output else num_classes]
    params = {}
    for li, (din, dout) in enumerate(zip(dims[:-1], dims[1:]), start=1):
        key, kw, kb = jax.random.split(key, 3)
        bound = 1.0 / jnp.sqrt(jnp.float32(din))
        params[f"w{li}"] = jax.random.uniform(
            kw, (din, dout), jnp.float32, minval=-bound, maxval=bound)
        params[f"b{li}"] = jax.random.uniform(
            kb, (1, dout), jnp.float32, minval=-bound, maxval=bound)
    return params


def reference_forward(x, params):
    """Pure-JAX reference with the same bf16-operand / f32-accumulate numerics."""
    xb = x.astype(jnp.bfloat16)
    w1 = params["w1"].astype(jnp.bfloat16)
    w2 = params["w2"].astype(jnp.bfloat16)
    w3 = params["w3"].astype(jnp.bfloat16)
    h = jnp.dot(xb, w1, preferred_element_type=jnp.float32) + params["b1"]
    h = jnp.maximum(h, 0.0)
    h = jnp.dot(h.astype(jnp.bfloat16), w2,
                preferred_element_type=jnp.float32) + params["b2"]
    h = jnp.maximum(h, 0.0)
    return jnp.dot(h.astype(jnp.bfloat16), w3,
                   preferred_element_type=jnp.float32) + params["b3"]


if __name__ == "__main__":
    # Small shapes consistent with the module defaults:
    # hidden_layers=[64, 32], standard classification head.
    batch = 16
    input_dim = 24
    hidden_layers = (64, 32)
    num_classes = 5

    key = jax.random.PRNGKey(0)
    key, kx = jax.random.split(key)
    x = jax.random.normal(kx, (batch, input_dim), jnp.float32)

    params = init_params(key, input_dim, hidden_layers, num_classes,
                         ordinal_output=False)

    out = drwiggle_nn_forward(x, params)          # auto block_batch (= full batch here)
    out = jax.block_until_ready(out)

    ref = reference_forward(x, params)
    assert out.shape == (batch, num_classes), out.shape
    assert jnp.allclose(out, ref, atol=1e-2, rtol=1e-2), \
        f"max abs err {jnp.max(jnp.abs(out - ref))}"

    print("KERNEL_OK")
</pallas_src>

<mosaic_0001>
module attributes {stable_mosaic.version = 11 : i64} {
  func.func @_mlp_kernel(%arg0: i32, %arg1: memref<16x24xbf16, #tpu.memory_space<vmem>>, %arg2: memref<24x64xbf16, #tpu.memory_space<vmem>>, %arg3: memref<1x64xf32, #tpu.memory_space<vmem>>, %arg4: memref<64x32xbf16, #tpu.memory_space<vmem>>, %arg5: memref<1x32xf32, #tpu.memory_space<vmem>>, %arg6: memref<32x5xbf16, #tpu.memory_space<vmem>>, %arg7: memref<1x5xf32, #tpu.memory_space<vmem>>, %arg8: memref<16x5xf32, #tpu.memory_space<vmem>>) attributes {dimension_semantics = [#tpu.dimension_semantics<parallel>], iteration_bounds = array<i64: 1>, scalar_prefetch = 0 : i64, scratch_operands = 0 : i64, tpu.core_type = #tpu.core_type<tc>, window_params = [{transform_indices = @transform_0, window_bounds = array<i64: 16, 24>}, {pipeline_mode = #tpu.pipeline_mode<synchronous>, transform_indices = @transform_1, window_bounds = array<i64: 24, 64>}, {pipeline_mode = #tpu.pipeline_mode<synchronous>, transform_indices = @transform_2, window_bounds = array<i64: 1, 64>}, {pipeline_mode = #tpu.pipeline_mode<synchronous>, transform_indices = @transform_3, window_bounds = array<i64: 64, 32>}, {pipeline_mode = #tpu.pipeline_mode<synchronous>, transform_indices = @transform_4, window_bounds = array<i64: 1, 32>}, {pipeline_mode = #tpu.pipeline_mode<synchronous>, transform_indices = @transform_5, window_bounds = array<i64: 32, 5>}, {pipeline_mode = #tpu.pipeline_mode<synchronous>, transform_indices = @transform_6, window_bounds = array<i64: 1, 5>}, {transform_indices = @transform_7, window_bounds = array<i64: 16, 5>}]} {
    %c0 = arith.constant 0 : index
    %c0_0 = arith.constant 0 : index
    %0 = vector.load %arg1[%c0, %c0_0] : memref<16x24xbf16, #tpu.memory_space<vmem>>, vector<16x24xbf16>
    %c0_1 = arith.constant 0 : index
    %c0_2 = arith.constant 0 : index
    %1 = vector.load %arg2[%c0_1, %c0_2] : memref<24x64xbf16, #tpu.memory_space<vmem>>, vector<24x64xbf16>
    %cst = arith.constant dense<0.000000e+00> : vector<16x64xf32>
    %2 = tpu.matmul %0, %1, %cst {dimension_numbers = #tpu.dot_dimension_numbers<[1], [0], [0], [1], [0, 0, 1, 1], [], []>} : vector<16x24xbf16>, vector<24x64xbf16>, vector<16x64xf32> -> vector<16x64xf32>
    %c0_3 = arith.constant 0 : index
    %c0_4 = arith.constant 0 : index
    %3 = vector.load %arg3[%c0_3, %c0_4] : memref<1x64xf32, #tpu.memory_space<vmem>>, vector<1x64xf32>
    %4 = vector.broadcast %3 : vector<1x64xf32> to vector<16x64xf32>
    %5 = arith.addf %2, %4 : vector<16x64xf32>
    %cst_5 = arith.constant 0.000000e+00 : f32
    %6 = vector.broadcast %cst_5 : f32 to vector<16x64xf32>
    %7 = arith.maximumf %5, %6 : vector<16x64xf32>
    %8 = arith.truncf %7 : vector<16x64xf32> to vector<16x64xbf16>
    %c0_6 = arith.constant 0 : index
    %c0_7 = arith.constant 0 : index
    %9 = vector.load %arg4[%c0_6, %c0_7] : memref<64x32xbf16, #tpu.memory_space<vmem>>, vector<64x32xbf16>
    %cst_8 = arith.constant dense<0.000000e+00> : vector<16x32xf32>
    %10 = tpu.matmul %8, %9, %cst_8 {dimension_numbers = #tpu.dot_dimension_numbers<[1], [0], [0], [1], [0, 0, 1, 1], [], []>} : vector<16x64xbf16>, vector<64x32xbf16>, vector<16x32xf32> -> vector<16x32xf32>
    %c0_9 = arith.constant 0 : index
    %c0_10 = arith.constant 0 : index
    %11 = vector.load %arg5[%c0_9, %c0_10] : memref<1x32xf32, #tpu.memory_space<vmem>>, vector<1x32xf32>
    %12 = vector.broadcast %11 : vector<1x32xf32> to vector<16x32xf32>
    %13 = arith.addf %10, %12 : vector<16x32xf32>
    %cst_11 = arith.constant 0.000000e+00 : f32
    %14 = vector.broadcast %cst_11 : f32 to vector<16x32xf32>
    %15 = arith.maximumf %13, %14 : vector<16x32xf32>
    %16 = arith.truncf %15 : vector<16x32xf32> to vector<16x32xbf16>
    %c0_12 = arith.constant 0 : index
    %c0_13 = arith.constant 0 : index
    %17 = vector.load %arg6[%c0_12, %c0_13] : memref<32x5xbf16, #tpu.memory_space<vmem>>, vector<32x5xbf16>
    %cst_14 = arith.constant dense<0.000000e+00> : vector<16x5xf32>
    %18 = tpu.matmul %16, %17, %cst_14 {dimension_numbers = #tpu.dot_dimension_numbers<[1], [0], [0], [1], [0, 0, 1, 1], [], []>} : vector<16x32xbf16>, vector<32x5xbf16>, vector<16x5xf32> -> vector<16x5xf32>
    %c0_15 = arith.constant 0 : index
    %c0_16 = arith.constant 0 : index
    %19 = vector.load %arg7[%c0_15, %c0_16] : memref<1x5xf32, #tpu.memory_space<vmem>>, vector<1x5xf32>
    %20 = vector.broadcast %19 : vector<1x5xf32> to vector<16x5xf32>
    %21 = arith.addf %18, %20 : vector<16x5xf32>
    %c0_17 = arith.constant 0 : index
    %c0_18 = arith.constant 0 : index
    %22 = vector.load %arg8[%c0_17, %c0_18] : memref<16x5xf32, #tpu.memory_space<vmem>>, vector<16x5xf32>
    tpu.vector_store %arg8[%c0_17, %c0_18], %21 {strides = array<i32>} : memref<16x5xf32, #tpu.memory_space<vmem>>, vector<16x5xf32>,
    return
  }
  func.func @transform_0(%arg0: i32) -> (i32, i32) {
    %c0_i32 = arith.constant 0 : i32
    %c0_i32_0 = arith.constant 0 : i32
    return %arg0, %c0_i32 : i32, i32
  }
  func.func @transform_1(%arg0: i32) -> (i32, i32) {
    %c0_i32 = arith.constant 0 : i32
    %c0_i32_0 = arith.constant 0 : i32
    %c0_i32_1 = arith.constant 0 : i32
    return %c0_i32, %c0_i32_0 : i32, i32
  }
  func.func @transform_2(%arg0: i32) -> (i32, i32) {
    %c0_i32 = arith.constant 0 : i32
    %c0_i32_0 = arith.constant 0 : i32
    %c0_i32_1 = arith.constant 0 : i32
    return %c0_i32, %c0_i32_0 : i32, i32
  }
  func.func @transform_3(%arg0: i32) -> (i32, i32) {
    %c0_i32 = arith.constant 0 : i32
    %c0_i32_0 = arith.constant 0 : i32
    %c0_i32_1 = arith.constant 0 : i32
    return %c0_i32, %c0_i32_0 : i32, i32
  }
  func.func @transform_4(%arg0: i32) -> (i32, i32) {
    %c0_i32 = arith.constant 0 : i32
    %c0_i32_0 = arith.constant 0 : i32
    %c0_i32_1 = arith.constant 0 : i32
    return %c0_i32, %c0_i32_0 : i32, i32
  }
  func.func @transform_5(%arg0: i32) -> (i32, i32) {
    %c0_i32 = arith.constant 0 : i32
    %c0_i32_0 = arith.constant 0 : i32
    %c0_i32_1 = arith.constant 0 : i32
    return %c0_i32, %c0_i32_0 : i32, i32
  }
  func.func @transform_6(%arg0: i32) -> (i32, i32) {
    %c0_i32 = arith.constant 0 : i32
    %c0_i32_0 = arith.constant 0 : i32
    %c0_i32_1 = arith.constant 0 : i32
    return %c0_i32, %c0_i32_0 : i32, i32
  }
  func.func @transform_7(%arg0: i32) -> (i32, i32) {
    %c0_i32 = arith.constant 0 : i32
    %c0_i32_0 = arith.constant 0 : i32
    return %arg0, %c0_i32 : i32, i32
  }
}

</mosaic_0001>

<bundles_post_ra>
// kernel: tpu_custom_call.1
= control target key start
LH: loop header
LB: loop body
LE: loop exit
PB: predicated region body
PF: predicated region fallthrough
CT: control target
= control target key end

     0   :  { %v332_v0 = vmov 0.0   ;;  %vm57_vm0 = vcmask 1043456   ;;  %vm333_vm1 = vmmov 0   ;;  %vm53_vm2 = vcmask 195584   ;;  %s419_s1 = inlined_call_operand.vmem [shape: bf16[24,64], index: 1, kind: input, shape index: {}]   ;;  %s420_s0 = inlined_call_operand.vmem [shape: bf16[16,24], index: 0, kind: input, shape index: {}]   ;;  %s421_s3 = inlined_call_operand.vmem [shape: bf16[64,32], index: 3, kind: input, shape index: {}]   ;;  %s422_s2 = inlined_call_operand.vmem [shape: f32[1,64], index: 2, kind: input, shape index: {}]   ;;  %s423_s5 = inlined_call_operand.vmem [shape: bf16[32,5], index: 5, kind: input, shape index: {}]   ;;  %s424_s4 = inlined_call_operand.vmem [shape: f32[1,32], index: 4, kind: input, shape index: {}]   ;;  %s425_s6 = inlined_call_operand.vmem [shape: f32[1,5], index: 6, kind: input, shape index: {}]   ;;  %s426_s7 = inlined_call_operand.vmem [shape: f32[16,5], index: 7, kind: output, shape index: {}]  }
   0x1   :  { %293 = vmatprep.subr.bf16.mxu0 %v332_v0  ;;  %v323_v1 = vld [vmem:[%s419_s1] sm:$0xff]   ;;  %297 = vmatprep.mubr.msk.bf16.mxu0 %vm333_vm1, %v332_v0  ;;  %v324_v2 = vld [vmem:[%s419_s1 + $0x8] ss:$0 sps:$4 sm:$0xff]   ;;  %v328_v7 = vld [vmem:[%s421_s3 + $0x10] sm:$0xff]   ;;  %vm144_vm3 = vcmask 523264   ;;  %vm215_vm4 = vcmask 261120  }
   0x2   :  { %301 = vmatprep.subr.bf16.mxu1 %v332_v0  ;;  %309 = vmatprep.mubr.msk.bf16.mxu1 %vm333_vm1, %v332_v0  ;;  %v59_v3 = vsel %vm57_vm0, %v324_v2, 0  ;;  %v326_v4 = vld [vmem:[%s421_s3] sm:$0xff]   ;;  %v327_v6 = vld [vmem:[%s421_s3 + $0x8] sm:$0xff]   ;;  %v329_v8 = vld [vmem:[%s421_s3 + $0x18] sm:$0xff]   ;;  %vm260_vm5 = vcmask 39936  }
   0x3   :  { %294 = vmatpush3.bf16.msra.mxu0 %v323_v1  ;;  %v325_v5 = vld [vmem:[%s420_s0] sm:$0xff]   ;;  %302 = vmatpush3.bf16.msra.mxu1 %v326_v4  ;;  %v331_v20 = vld [vmem:[%s423_s5 + $0x8] sm:$0xff]  }
   0x4   :  { %295 = vmatprep.subr.bf16.mxu0 %v332_v0  ;;  %303 = vmatprep.subr.bf16.mxu1 %v332_v0  ;;  %v267_v9 = vld [vmem:[%s422_s2] ss:$0 sm:$0xff] }
   0x5   :  { %v330_v19 = vld [vmem:[%s423_s5] sm:$0xff]  }
   0x6   :  { %v272_v21 = vld [vmem:[%s424_s4] ss:$0 sm:$0xff] }
   0x7   :  { %296 = vmatpush3.bf16.msra.mxu0 %v59_v3  ;;  %304 = vmatpush3.bf16.msra.mxu1 %v327_v6  ;;  %v278_v31 = vld [vmem:[%s425_s6] ss:$0 sm:$0xff] }
   0x8   :  { %313 = vmatprep.subr.bf16.mxu0 %v332_v0  ;;  %305 = vmatprep.subr.bf16.mxu1 %v332_v0 }
   0xa   :  { %298 = vmatmul.mubr.msk.bf16.vlgmr.msra.gmra.mrb[0].mxu0 %vm53_vm2, %v325_v5 }
   0xb   :  { %317 = vmatprep.mubr.msk.bf16.mxu0 %vm333_vm1, %v332_v0  ;;  %306 = vmatpush3.bf16.msra.mxu1 %v328_v7 }
   0xc   :  { %307 = vmatprep.subr.bf16.mxu1 %v332_v0  ;;  %314 = vmatpush3.bf16.msra.mxu0 %v330_v19 }
   0xd   :  { %315 = vmatprep.subr.bf16.mxu0 %v332_v0 }
   0xf   :  { %308 = vmatpush3.bf16.msra.mxu1 %v329_v8 }
  0x10   :  { %316 = vmatpush3.bf16.msra.mxu0 %v331_v20 }
  0xdd   :  { %v95_v10 = vpop.f32.mrb[0].mxu0 }
  0xde   :  { %v96_v11 = vadd.f32 %v267_v9, %v95_v10  ;;  %v299_v12 = vpop.f32.mrb[1].mxu0 }
  0xdf   :  { %v98_v13 = vpop.f32.mrb[2].mxu0 }
  0xe0   :  { %v99_v14 = vadd.f32 %v267_v9, %v98_v13  ;;  %v300_v15 = vpop.f32.mrb[3].mxu0  ;;  %v102_v16 = vmax.f32 %v96_v11, 0.0 }
  0xe2   :  { %v103_v17 = vmax.f32 %v99_v14, 0.0 }
  0xe4   :  { %v104_v18 = vpack.c.bf16 %v103_v17, %v102_v16 }
  0xe6   :  { %310 = vmatmul.mubr.msk.bf16.vlgmr.msra.gmra.mrb[0].mxu1 %vm144_vm3, %v104_v18 }
 0x1b9   :  { %v182_v22 = vpop.f32.mrb[0].mxu1 }
 0x1ba   :  { %v183_v23 = vadd.f32 %v272_v21, %v182_v22  ;;  %v311_v24 = vpop.f32.mrb[1].mxu1 }
 0x1bb   :  { %v185_v25 = vpop.f32.mrb[2].mxu1 }
 0x1bc   :  { %v186_v26 = vadd.f32 %v272_v21, %v185_v25  ;;  %v312_v27 = vpop.f32.mrb[3].mxu1  ;;  %v189_v28 = vmax.f32 %v183_v23, 0.0 }
 0x1be   :  { %v190_v29 = vmax.f32 %v186_v26, 0.0 }
 0x1c0   :  { %v191_v30 = vpack.c.bf16 %v190_v29, %v189_v28 }
 0x1c2   :  { %318 = vmatmul.mubr.msk.bf16.vlgmr.msra.gmra.mrb[4].mxu0 %vm215_vm4, %v191_v30 }
 0x295   :  { %v253_v32 = vpop.f32.mrb[4].mxu0 }
 0x296   :  { %v254_v33 = vadd.f32 %v278_v31, %v253_v32  ;;  %v319_v34 = vpop.f32.mrb[5].mxu0 }
 0x297   :  { %v256_v35 = vpop.f32.mrb[6].mxu0 }
 0x298   :  { %261 = vst.msk [vmem:[%s426_s7] sm:$0xff] %vm260_vm5, %v254_v33  ;;  %v257_v36 = vadd.f32 %v278_v31, %v256_v35  ;;  %v320_v37 = vpop.f32.mrb[7].mxu0 }
 0x29a   :  { %262 = vst.msk [vmem:[%s426_s7 + $0x8] sm:$0xff] %vm260_vm5, %v257_v36 }

</bundles_post_ra>
